<compile_context>
chip_gen: v5e
topology: v5e:2x2
jax: 0.10.0
libtpu: 0.0.40
codegen_flags: <defaults>
</compile_context>

<pallas_src>
import jax
import jax.numpy as jnp
from jax.experimental import pallas as pl
from jax.experimental.pallas import tpu as pltpu


def _round_up(x, m):
    return ((x + m - 1) // m) * m


# ----------------------------------------------------------------------------
# Kernels
# ----------------------------------------------------------------------------
def _bce_single_block_kernel(p_ref, t_ref, m_ref, o_ref):
    """Whole problem in one VMEM block (full-array BlockSpecs, no padding needed)."""
    x = p_ref[...].astype(jnp.float32)
    z = t_ref[...].astype(jnp.float32)
    w = m_ref[...].astype(jnp.float32)
    loss = jnp.maximum(x, 0.0) - x * z + jnp.log1p(jnp.exp(-jnp.abs(x)))
    o_ref[...] = jnp.sum(w * loss, axis=1, keepdims=True)


def _make_tiled_kernel(n_total, tn, tb):
    """Grid = (batch tiles, N tiles); N (reduction) is the last, 'arbitrary' axis.

    The BCE math is fused into the per-128-lane fold so no (tb, tn) temporary is
    ever materialized. The ragged-N tail is masked in-kernel on the *weighted*
    contribution (covers garbage x, z and w in the stale tail lanes).
    """
    n_chunks = tn // 128
    needs_tail_mask = (n_total % tn) != 0

    def kernel(p_ref, t_ref, m_ref, o_ref, acc_ref):
        ki = pl.program_id(1)

        @pl.when(ki == 0)
        def _():
            acc_ref[...] = jnp.zeros_like(acc_ref)

        if needs_tail_mask:
            lane = jax.lax.broadcasted_iota(jnp.int32, (tb, 128), 1)
            base = ki * tn

        partial = jnp.zeros((tb, 128), jnp.float32)
        for j in range(n_chunks):          # static unroll; VPU-only per chunk
            lo = j * 128
            x = p_ref[:, lo:lo + 128].astype(jnp.float32)
            z = t_ref[:, lo:lo + 128].astype(jnp.float32)
            w = m_ref[:, lo:lo + 128].astype(jnp.float32)
            loss = jnp.maximum(x, 0.0) - x * z + jnp.log1p(jnp.exp(-jnp.abs(x)))
            contrib = w * loss
            if needs_tail_mask:
                # Mask the final contribution: even NaN/Inf garbage in the
                # out-of-bounds lanes (stale VMEM) cannot leak into the row sum.
                valid = (base + lo + lane) < n_total
                contrib = jnp.where(valid, contrib, 0.0)
            partial = partial + contrib
        acc_ref[...] += partial

        @pl.when(ki == pl.num_programs(1) - 1)
        def _():
            # Single XLU cross-lane reduce + narrow (lane-1) store per batch block.
            o_ref[...] = jnp.sum(acc_ref[...], axis=1, keepdims=True)

    return kernel


# ----------------------------------------------------------------------------
# Wrapper
# ----------------------------------------------------------------------------
def sigmoid_bin_cel(preds, targets, mask, *, tb=None, tn=None,
                    single_block_max_bytes=2 << 20,
                    vmem_input_budget_bytes=24 << 20):
    """Pallas equivalent of SigmoidBinCEL.forward -> per-row weighted loss sum, shape [B]."""
    B, N = preds.shape
    assert targets.shape == (B, N) and mask.shape == (B, N)

    itemsizes = (jnp.dtype(preds.dtype).itemsize,
                 jnp.dtype(targets.dtype).itemsize,
                 jnp.dtype(mask.dtype).itemsize)
    bytes_in = sum(itemsizes)
    cost = pl.CostEstimate(
        flops=7 * B * N,
        transcendentals=2 * B * N,
        bytes_accessed=B * N * bytes_in + B * 4,
    )

    # ---- Small-problem fast path: one full-array block, no grid loop, no pad. ----
    if B * N * bytes_in <= single_block_max_bytes:
        out = pl.pallas_call(
            _bce_single_block_kernel,
            out_shape=jax.ShapeDtypeStruct((B, 1), jnp.float32),
            grid=(1,),
            in_specs=[
                pl.BlockSpec((B, N), lambda i: (0, 0)),
                pl.BlockSpec((B, N), lambda i: (0, 0)),
                pl.BlockSpec((B, N), lambda i: (0, 0)),
            ],
            out_specs=pl.BlockSpec((B, 1), lambda i: (0, 0)),
            compiler_params=pltpu.CompilerParams(vmem_limit_bytes=48 << 20),
            cost_estimate=cost,
        )(preds, targets, mask)
        return out[:, 0]

    # ---- Tiled path: VMEM-budgeted (tb, tn) tiles, batch parallel, N reduction. ----
    # Sublane alignment follows the narrowest input dtype (f32->8, bf16->16, int8->32).
    sub = {4: 8, 2: 16, 1: 32}[min(itemsizes)]

    if tb is None:
        # >=2 batch blocks whenever B allows (keeps both v7x TensorCores busy);
        # capped at 128 sublanes to bound vreg pressure of the (tb,128) accumulator.
        tb = min(128, _round_up(pl.cdiv(B, 2), sub))
    tb = max(sub, _round_up(min(tb, _round_up(B, sub)), sub))

    n_ceil = _round_up(N, 128)
    if tn is None:
        # Per-step byte budget: 3 inputs x 2 buffers x tb x tn x itemsize <= budget.
        tn = vmem_input_budget_bytes // (2 * tb * bytes_in)
    tn = max(128, min((tn // 128) * 128, 8192, n_ceil))

    grid = (pl.cdiv(B, tb), pl.cdiv(N, tn))
    kernel = _make_tiled_kernel(n_total=N, tn=tn, tb=tb)

    out = pl.pallas_call(
        kernel,
        out_shape=jax.ShapeDtypeStruct((B, 1), jnp.float32),
        grid_spec=pltpu.PrefetchScalarGridSpec(
            num_scalar_prefetch=0,
            grid=grid,
            in_specs=[
                pl.BlockSpec((tb, tn), lambda bi, ki: (bi, ki)),
                pl.BlockSpec((tb, tn), lambda bi, ki: (bi, ki)),
                pl.BlockSpec((tb, tn), lambda bi, ki: (bi, ki)),
            ],
            out_specs=pl.BlockSpec((tb, 1), lambda bi, ki: (bi, 0)),
            scratch_shapes=[pltpu.VMEM((tb, 128), jnp.float32)],
        ),
        compiler_params=pltpu.CompilerParams(
            dimension_semantics=("parallel", "arbitrary"),
            vmem_limit_bytes=48 << 20,   # headroom on v7x's 64 MiB physical VMEM
        ),
        cost_estimate=cost,
    )(preds, targets, mask)
    return out[:, 0]


# ----------------------------------------------------------------------------
# Pure-JAX reference (matches torch BCEWithLogits(weight=mask, reduction='none').sum(dim=1))
# ----------------------------------------------------------------------------
def _reference(preds, targets, mask):
    x = preds.astype(jnp.float32)
    z = targets.astype(jnp.float32)
    w = mask.astype(jnp.float32)
    loss = jnp.maximum(x, 0.0) - x * z + jnp.log1p(jnp.exp(-jnp.abs(x)))
    return jnp.sum(w * loss, axis=1)


if __name__ == "__main__":
    # SigmoidBinCEL has no learnable parameters; just build deterministic inputs.
    key = jax.random.PRNGKey(0)
    ks = jax.random.split(key, 9)

    # Case 1: small word2vec-style batch (B centers, N = 1 pos + negatives)
    # -> single-block fast path, no padding, no grid loop.
    B, N = 8, 256
    preds = jax.random.normal(ks[0], (B, N), dtype=jnp.float32) * 2.0
    targets = (jax.random.uniform(ks[1], (B, N)) < 0.3).astype(jnp.float32)
    mask = (jax.random.uniform(ks[2], (B, N)) < 0.8).astype(jnp.float32)

    out = jax.block_until_ready(sigmoid_bin_cel(preds, targets, mask))
    ref = _reference(preds, targets, mask)
    assert out.shape == (B,)
    assert jnp.allclose(out, ref, rtol=1e-5, atol=1e-5), (out, ref)

    # Case 2: unaligned shapes, narrow (bf16) targets/mask, forced through the
    # tiled path -> exercises in-kernel ragged-N tail masking, multi-step
    # reduction grid and a partial batch block (no wrapper-side padding).
    B2, N2 = 20, 1000
    preds2 = jax.random.normal(ks[3], (B2, N2), dtype=jnp.float32) * 2.0
    targets2 = (jax.random.uniform(ks[4], (B2, N2)) < 0.3).astype(jnp.bfloat16)
    mask2 = (jax.random.uniform(ks[5], (B2, N2)) < 0.8).astype(jnp.bfloat16)

    out2 = jax.block_until_ready(
        sigmoid_bin_cel(preds2, targets2, mask2, tb=8, tn=256,
                        single_block_max_bytes=0))
    ref2 = _reference(preds2, targets2, mask2)
    assert out2.shape == (B2,)
    assert jnp.allclose(out2, ref2, rtol=1e-5, atol=1e-4), (out2, ref2)

    # Case 3: auto tile selection on the tiled path (>=2 batch blocks, budgeted tn).
    B3, N3 = 48, 1536
    preds3 = jax.random.normal(ks[6], (B3, N3), dtype=jnp.float32) * 2.0
    targets3 = (jax.random.uniform(ks[7], (B3, N3)) < 0.3).astype(jnp.float32)
    mask3 = (jax.random.uniform(ks[8], (B3, N3)) < 0.8).astype(jnp.float32)

    out3 = jax.block_until_ready(
        sigmoid_bin_cel(preds3, targets3, mask3, single_block_max_bytes=0))
    ref3 = _reference(preds3, targets3, mask3)
    assert out3.shape == (B3,)
    assert jnp.allclose(out3, ref3, rtol=1e-5, atol=1e-4), (out3, ref3)

    print("KERNEL_OK")
</pallas_src>

<mosaic_0001>
module attributes {stable_mosaic.version = 11 : i64} {
  func.func @_bce_single_block_kernel(%arg0: i32, %arg1: memref<8x256xf32, #tpu.memory_space<vmem>>, %arg2: memref<8x256xf32, #tpu.memory_space<vmem>>, %arg3: memref<8x256xf32, #tpu.memory_space<vmem>>, %arg4: memref<8x1xf32, #tpu.memory_space<vmem>>) attributes {dimension_semantics = [#tpu.dimension_semantics<arbitrary>], iteration_bounds = array<i64: 1>, scalar_prefetch = 0 : i64, scratch_operands = 0 : i64, tpu.core_type = #tpu.core_type<tc>, window_params = [{pipeline_mode = #tpu.pipeline_mode<synchronous>, transform_indices = @transform_0, window_bounds = array<i64: 8, 256>}, {pipeline_mode = #tpu.pipeline_mode<synchronous>, transform_indices = @transform_1, window_bounds = array<i64: 8, 256>}, {pipeline_mode = #tpu.pipeline_mode<synchronous>, transform_indices = @transform_2, window_bounds = array<i64: 8, 256>}, {pipeline_mode = #tpu.pipeline_mode<synchronous>, transform_indices = @transform_3, window_bounds = array<i64: 8, 1>}]} {
    %c0 = arith.constant 0 : index
    %c0_0 = arith.constant 0 : index
    %0 = vector.load %arg1[%c0, %c0_0] : memref<8x256xf32, #tpu.memory_space<vmem>>, vector<8x256xf32>
    %c0_1 = arith.constant 0 : index
    %c0_2 = arith.constant 0 : index
    %1 = vector.load %arg2[%c0_1, %c0_2] : memref<8x256xf32, #tpu.memory_space<vmem>>, vector<8x256xf32>
    %c0_3 = arith.constant 0 : index
    %c0_4 = arith.constant 0 : index
    %2 = vector.load %arg3[%c0_3, %c0_4] : memref<8x256xf32, #tpu.memory_space<vmem>>, vector<8x256xf32>
    %cst = arith.constant 0.000000e+00 : f32
    %3 = vector.broadcast %cst : f32 to vector<8x256xf32>
    %4 = arith.maximumf %0, %3 : vector<8x256xf32>
    %5 = arith.mulf %0, %1 : vector<8x256xf32>
    %6 = arith.subf %4, %5 : vector<8x256xf32>
    %7 = math.absf %0 : vector<8x256xf32>
    %cst_5 = arith.constant 0.000000e+00 : f32
    %8 = vector.broadcast %cst_5 : f32 to vector<8x256xf32>
    %9 = arith.subf %8, %7 : vector<8x256xf32>
    %10 = math.exp %9 : vector<8x256xf32>
    %11 = math.log1p %10 : vector<8x256xf32>
    %12 = arith.addf %6, %11 : vector<8x256xf32>
    %13 = arith.mulf %2, %12 : vector<8x256xf32>
    %cst_6 = arith.constant dense<0.000000e+00> : vector<8xf32>
    %14 = vector.multi_reduction <add>, %13, %cst_6 [1] : vector<8x256xf32> to vector<8xf32>
    %15 = vector.shape_cast %14 : vector<8xf32> to vector<8x1xf32>
    %c0_7 = arith.constant 0 : index
    %c0_8 = arith.constant 0 : index
    %16 = vector.load %arg4[%c0_7, %c0_8] : memref<8x1xf32, #tpu.memory_space<vmem>>, vector<8x1xf32>
    tpu.vector_store %arg4[%c0_7, %c0_8], %15 {strides = array<i32>} : memref<8x1xf32, #tpu.memory_space<vmem>>, vector<8x1xf32>,
    return
  }
  func.func @transform_0(%arg0: i32) -> (i32, i32) {
    %c0_i32 = arith.constant 0 : i32
    %c0_i32_0 = arith.constant 0 : i32
    %c0_i32_1 = arith.constant 0 : i32
    return %c0_i32, %c0_i32_0 : i32, i32
  }
  func.func @transform_1(%arg0: i32) -> (i32, i32) {
    %c0_i32 = arith.constant 0 : i32
    %c0_i32_0 = arith.constant 0 : i32
    %c0_i32_1 = arith.constant 0 : i32
    return %c0_i32, %c0_i32_0 : i32, i32
  }
  func.func @transform_2(%arg0: i32) -> (i32, i32) {
    %c0_i32 = arith.constant 0 : i32
    %c0_i32_0 = arith.constant 0 : i32
    %c0_i32_1 = arith.constant 0 : i32
    return %c0_i32, %c0_i32_0 : i32, i32
  }
  func.func @transform_3(%arg0: i32) -> (i32, i32) {
    %c0_i32 = arith.constant 0 : i32
    %c0_i32_0 = arith.constant 0 : i32
    %c0_i32_1 = arith.constant 0 : i32
    return %c0_i32, %c0_i32_0 : i32, i32
  }
}

</mosaic_0001>

<bundles_post_ra>
// kernel: tpu_custom_call.1
= control target key start
LH: loop header
LB: loop body
LE: loop exit
PB: predicated region body
PF: predicated region fallthrough
CT: control target
= control target key end

     0   :  { %8 = vsyncpa [#allocation3], 0  ;;  %s230_s0 = inlined_call_operand.hbm [shape: f32[8,256], index: 0, kind: input, shape index: {}]   ;;  %s231_s1 = inlined_call_operand.hbm [shape: f32[8,256], index: 1, kind: input, shape index: {}]   ;;  %s232_s2 = inlined_call_operand.hbm [shape: f32[8,256], index: 2, kind: input, shape index: {}]   ;;  %s233_s3 = inlined_call_operand.vmem [shape: f32[8,1], index: 3, kind: output, shape index: {}]  }
   0x1   :  { %9 = vsyncpa [#allocation5], 0  ;;  %s26_s14 = sshll.u32 %s231_s1, 4  ;;  %s195_s15 = smov [#allocation4]   ;;  %s27_s14 = int_to_ptr.hbm [resolvable:$true] %s26_s14 }
   0x2   :  { %s28_s16 = sshll.u32 %s195_s15, 4  ;;  %s15_s19 = sshll.u32 %s230_s0, 4  ;;  %s29_s16 = int_to_ptr.vmem [resolvable:$true] %s28_s16  ;;  %s16_s19 = int_to_ptr.hbm [resolvable:$true] %s15_s19 }
   0x3   :  { %31 = dma.hbm_to_vmem [thread:$0]  %s27_s14, 256, %s29_s16, [#allocation5]  }
   0x4   :  { %s196_s20 = smov [#allocation2]   ;;  %s37_s24 = sshll.u32 %s232_s2, 4  ;;  %s38_s24 = int_to_ptr.hbm [resolvable:$true] %s37_s24 }
   0x5   :  { %s17_s21 = sshll.u32 %s196_s20, 4  ;;  %s197_s1 = smov [#allocation6]   ;;  %s18_s21 = int_to_ptr.vmem [resolvable:$true] %s17_s21 }
   0x6   :  { %20 = dma.hbm_to_vmem [thread:$0]  %s16_s19, 256, %s18_s21, [#allocation3]  }
   0x7   :  { %s39_s25 = sshll.u32 %s197_s1, 4  ;;  %s40_s25 = int_to_ptr.vmem [resolvable:$true] %s39_s25 }
   0x8   :  { %42 = dma.hbm_to_vmem [thread:$0]  %s38_s24, 256, %s40_s25, [#allocation5]  }
   0x9   :  { %191 = dma.done.wait [#allocation3], 256  }
   0xa   :  { %192 = vsyncadd [#allocation3], 4294967040 }
   0xb   :  { %193 = dma.done.wait [#allocation5], 512  }
   0xc   :  { %194 = vsyncadd [#allocation5], 4294966784  ;;  %v55_v0 = vld [vmem:[#allocation2] sm:$0xff]  ;;  %v56_v1 = vld [vmem:[#allocation2 + $0x8] sm:$0xff]  ;;  %vm100_vm2 = vcmask 7168  }
   0xd   :  { %v67_v2 = vand.u32 2147483647, %v55_v0  ;;  %v68_v3 = vand.u32 2147483647, %v56_v1  ;;  %v57_v12 = vld [vmem:[#allocation4] sm:$0xff]  ;;  %v58_v15 = vld [vmem:[#allocation4 + $0x8] sm:$0xff] }
   0xe   :  { %v61_v17 = vmax.f32 %v55_v0, 0.0  ;;  %v63_v18 = vmul.f32 %v57_v12, %v55_v0  ;;  %v62_v21 = vmax.f32 %v56_v1, 0.0  ;;  %v64_v22 = vmul.f32 %v58_v15, %v56_v1  ;;  %v59_v32 = vld [vmem:[#allocation6] sm:$0xff]  ;;  %v60_v34 = vld [vmem:[#allocation6 + $0x8] sm:$0xff] }
   0xf   :  { %v69_v4 = vsub.f32 0.0, %v67_v2  ;;  %v70_v5 = vsub.f32 0.0, %v68_v3 }
  0x10   :  { %v65_v26 = vsub.f32 %v61_v17, %v63_v18  ;;  %v66_v29 = vsub.f32 %v62_v21, %v64_v22 }
  0x11   :  { %v71_v6 = vmul.f32 1.442695, %v69_v4  ;;  %v73_v7 = vmul.f32 1.442695, %v70_v5 }
  0x13   :  { %111 = vpow2.f32 %v71_v6 }
  0x14   :  { %113 = vpow2.f32 %v73_v7 }
  0x19   :  { %v112_v8 = vpop.eup %111 }
  0x1a   :  { %v114_v9 = vpop.eup %113  ;;  %v75_v10 = vadd.f32 1.0, %v112_v8  ;;  %v78_v11 = vmul.f32 -0.5, %v112_v8  ;;  %v81_v19 = vand.u32 2147483647, %v112_v8 }
  0x1b   :  { %v84_v13 = vadd.f32 1.0, %v114_v9  ;;  %v87_v14 = vmul.f32 -0.5, %v114_v9  ;;  %v90_v23 = vand.u32 2147483647, %v114_v9 }
  0x1c   :  { %115 = vlog2.f32 %v75_v10  ;;  %v79_v16 = vadd.f32 1.0, %v78_v11  ;;  %vm82_vm0 = vcmp.lt.f32.partialorder %v81_v19, 0.0004427343 }
  0x1d   :  { %117 = vlog2.f32 %v84_v13  ;;  %v88_v20 = vadd.f32 1.0, %v87_v14  ;;  %vm91_vm1 = vcmp.lt.f32.partialorder %v90_v23, 0.0004427343 }
  0x1e   :  { %v80_v24 = vmul.f32 %v112_v8, %v79_v16 }
  0x1f   :  { %v89_v27 = vmul.f32 %v114_v9, %v88_v20 }
  0x22   :  { %v116_v25 = vpop.eup %115 }
  0x23   :  { %v118_v28 = vpop.eup %117  ;;  %v77_v30 = vmul.f32 0.6931472, %v116_v25 }
  0x24   :  { %v86_v31 = vmul.f32 0.6931472, %v118_v28 }
  0x25   :  { %v83_v33 = vsel %vm82_vm0, %v80_v24, %v77_v30 }
  0x26   :  { %v92_v35 = vsel %vm91_vm1, %v89_v27, %v86_v31  ;;  %v93_v36 = vadd.f32 %v83_v33, %v65_v26 }
  0x27   :  { %v94_v37 = vadd.f32 %v92_v35, %v66_v29 }
  0x28   :  { %v95_v38 = vmul.f32 %v93_v36, %v59_v32 }
  0x29   :  { %v96_v39 = vmul.f32 %v94_v37, %v60_v34 }
  0x2b   :  { %v97_v40 = vadd.f32 %v96_v39, %v95_v38 }
  0x2d   :  { %98 = vadd.xlane.f32.xlu0 %v97_v40 }
  0xa0   :  { %v99_v41 = vpop.xlane.xlu0 %98 }
  0xa1   :  { %101 = vst.msk [vmem:[%s233_s3] sm:$0xff] %vm100_vm2, %v99_v41 }
  0xa2   :  { %106 = vsyncpa [#allocation3], 1 }
  0xa3   :  { %107 = vsyncpa [#allocation5], 1 }

</bundles_post_ra>
